<compile_context>
chip_gen: v6e
topology: v6e:2x2x1
jax: 0.10.0
libtpu: 0.0.40
codegen_flags: <defaults>
</compile_context>

<pallas_src>
import jax
import jax.numpy as jnp
from jax.experimental import pallas as pl
from jax.experimental.pallas import tpu as pltpu


def _block_diag(w, f):
    """[din, dout] -> [f*din, f*dout] block-diagonal (f copies of w)."""
    din, dout = w.shape
    eye = jnp.eye(f, dtype=w.dtype)
    return (eye[:, None, :, None] * w[None, :, None, :]).reshape(f * din, f * dout)


def _field_sum_selector(f, d, dtype):
    """[f*d, d] stacked identities: (slab @ S) sums the f field chunks on the MXU."""
    return jnp.tile(jnp.eye(d, dtype=jnp.float32), (f, 1)).astype(dtype)


def _deepfm_kernel(fm_lin_ref, emb_ref, se_ref, w1_ref, b1_ref, w2_ref, b2_ref,
                   sh_ref, out_ref):
    emb = emb_ref[...]                                  # [TB, F*D]  (bf16)
    emb_f32 = emb.astype(jnp.float32)

    # ---- FM second order: field sums via selector matmul on the MXU ----
    sum_e = jnp.dot(emb, se_ref[...],
                    preferred_element_type=jnp.float32)            # [TB, D]
    sum_sq = jnp.sum(emb_f32 * emb_f32, axis=1, keepdims=True)     # [TB, 1]
    fm2 = 0.5 * (jnp.sum(sum_e * sum_e, axis=1, keepdims=True) - sum_sq)
    fm = fm_lin_ref[...] + fm2                                     # [TB, 1]

    # ---- deep block: per-field (Linear->ReLU)x2 as block-diag matmuls ----
    h = jnp.dot(emb, w1_ref[...], preferred_element_type=jnp.float32)
    h = jnp.maximum(h + b1_ref[...], 0.0)                          # [TB, F*H1]
    h = jnp.dot(h.astype(w2_ref.dtype), w2_ref[...],
                preferred_element_type=jnp.float32)
    h = jnp.maximum(h + b2_ref[...], 0.0)                          # [TB, F*H2]
    # field-sum of the per-field MLP outputs, again on the MXU
    higher = jnp.dot(h.astype(sh_ref.dtype), sh_ref[...],
                     preferred_element_type=jnp.float32)           # [TB, H2]

    out_ref[...] = (fm + higher).astype(out_ref.dtype)


def deepfm_forward(x, feature_emb, params, *, tb=4096, matmul_dtype=jnp.bfloat16):
    B, F = x.shape
    _, F2, D = feature_emb.shape
    assert F2 == F
    w_fm, b_fm, w1, b1, w2, b2 = params
    H1 = w1.shape[1]
    H2 = w2.shape[1]

    # --- batch tile: multiple of 8, no larger than the batch, and (when the
    #     batch allows) small enough to give the grid >= 2 steps so both v7x
    #     TensorCores get work and double-buffering is exercised ---
    tb = max(8, (int(tb) // 8) * 8)
    tb = min(tb, ((B + 7) // 8) * 8)
    if B > 8:
        tb = min(tb, (((B + 1) // 2) + 7) // 8 * 8)
    grid = (pl.cdiv(B, tb),)          # ragged last block handled by Pallas clipping

    # --- wrapper-side prep (cheap, one-off) ---
    # FM first order precomputed here -> x never enters the kernel.
    fm_lin = (x.astype(jnp.float32) @ w_fm.astype(jnp.float32)
              + b_fm.astype(jnp.float32)).astype(jnp.float32)      # [B, 1]
    emb_flat = feature_emb.reshape(B, F * D).astype(matmul_dtype)  # lane-dense slab
    s_e = _field_sum_selector(F, D, matmul_dtype)                  # [F*D,  D]
    s_h = _field_sum_selector(F, H2, matmul_dtype)                 # [F*H2, H2]
    w1b = _block_diag(w1.astype(jnp.float32), F).astype(matmul_dtype)  # [F*D,  F*H1]
    w2b = _block_diag(w2.astype(jnp.float32), F).astype(matmul_dtype)  # [F*H1, F*H2]
    b1b = jnp.tile(b1.reshape(1, H1), (1, F)).astype(jnp.float32)      # [1, F*H1]
    b2b = jnp.tile(b2.reshape(1, H2), (1, F)).astype(jnp.float32)      # [1, F*H2]

    out = pl.pallas_call(
        _deepfm_kernel,
        out_shape=jax.ShapeDtypeStruct((B, H2), jnp.float32),
        grid=grid,
        in_specs=[
            pl.BlockSpec((tb, 1), lambda b: (b, 0)),            # fm_lin tile
            pl.BlockSpec((tb, F * D), lambda b: (b, 0)),        # emb tile (bf16)
            pl.BlockSpec((F * D, D), lambda b: (0, 0)),         # S_e (resident)
            pl.BlockSpec((F * D, F * H1), lambda b: (0, 0)),    # W1 block-diag
            pl.BlockSpec((1, F * H1), lambda b: (0, 0)),        # b1 tiled
            pl.BlockSpec((F * H1, F * H2), lambda b: (0, 0)),   # W2 block-diag
            pl.BlockSpec((1, F * H2), lambda b: (0, 0)),        # b2 tiled
            pl.BlockSpec((F * H2, H2), lambda b: (0, 0)),       # S_h (resident)
        ],
        out_specs=pl.BlockSpec((tb, H2), lambda b: (b, 0)),
        compiler_params=pltpu.CompilerParams(
            dimension_semantics=("parallel",),   # batch tiles across TCs (v7x)
            vmem_limit_bytes=48 * 1024 * 1024,   # <= v7x's 64 MiB physical VMEM
        ),
    )(fm_lin, emb_flat, s_e, w1b, b1b, w2b, b2b, s_h)

    return out


def deepfm_reference(x, feature_emb, params, *, matmul_dtype=jnp.float32):
    """Pure-JAX reference mirroring the PyTorch forward.

    With matmul_dtype=float32 this is the exact module semantics; with bf16 it
    applies the same input/weight/intermediate rounding the kernel uses so the
    comparison isolates kernel bugs from intentional bf16 quantization.
    """
    w_fm, b_fm, w1, b1, w2, b2 = params
    cast = lambda a: a.astype(matmul_dtype).astype(jnp.float32)
    emb = cast(feature_emb)
    fm_lin = x @ w_fm + b_fm[0, 0]
    sum_e = emb.sum(1)
    fm_out = fm_lin + 0.5 * ((sum_e ** 2).sum(-1, keepdims=True)
                             - (emb ** 2).sum((1, 2))[:, None])
    h = jnp.maximum(emb @ cast(w1) + b1[0], 0.0)
    h = cast(h)
    h = jnp.maximum(h @ cast(w2) + b2[0], 0.0)
    h = cast(h)
    return fm_out + h.sum(1)


if __name__ == "__main__":
    key = jax.random.PRNGKey(0)
    k_x, k_e, k_wfm, k_w1, k_w2, k_b1, k_b2 = jax.random.split(key, 7)

    # category_list of 4 fields, hidden_dims = [16, 16, 16]
    B, F = 200, 4                     # B forces a ragged last block (no jnp.pad path)
    hidden_dims = [16, 16, 16]
    D, H1, H2 = hidden_dims

    x = jax.random.normal(k_x, (B, F), dtype=jnp.float32)
    feature_emb = jax.random.normal(k_e, (B, F, D), dtype=jnp.float32)

    # Deterministic synthetic parameters (no checkpoint loading).
    w_fm = 0.1 * jax.random.normal(k_wfm, (F, 1), dtype=jnp.float32)
    b_fm = jnp.full((1, 1), 0.05, dtype=jnp.float32)          # bias_yn=True
    w1 = 0.1 * jax.random.normal(k_w1, (D, H1), dtype=jnp.float32)
    b1 = 0.01 * jax.random.normal(k_b1, (1, H1), dtype=jnp.float32)
    w2 = 0.1 * jax.random.normal(k_w2, (H1, H2), dtype=jnp.float32)
    b2 = 0.01 * jax.random.normal(k_b2, (1, H2), dtype=jnp.float32)

    params = (w_fm, b_fm, w1, b1, w2, b2)

    # tb=64 -> 4 grid steps (last one ragged) so pipelining + clipping are exercised.
    out = deepfm_forward(x, feature_emb, params, tb=64)
    out = jax.block_until_ready(out)

    ref = deepfm_reference(x, feature_emb, params, matmul_dtype=jnp.bfloat16)
    assert out.shape == (B, H2), out.shape
    assert jnp.allclose(out, ref, atol=2e-2, rtol=2e-2), (
        float(jnp.max(jnp.abs(out - ref))))

    print("KERNEL_OK")
</pallas_src>

<mosaic_0001>
module attributes {stable_mosaic.version = 11 : i64} {
  func.func @_deepfm_kernel(%arg0: i32, %arg1: memref<64x1xf32, #tpu.memory_space<vmem>>, %arg2: memref<64x64xbf16, #tpu.memory_space<vmem>>, %arg3: memref<64x16xbf16, #tpu.memory_space<vmem>>, %arg4: memref<64x64xbf16, #tpu.memory_space<vmem>>, %arg5: memref<1x64xf32, #tpu.memory_space<vmem>>, %arg6: memref<64x64xbf16, #tpu.memory_space<vmem>>, %arg7: memref<1x64xf32, #tpu.memory_space<vmem>>, %arg8: memref<64x16xbf16, #tpu.memory_space<vmem>>, %arg9: memref<64x16xf32, #tpu.memory_space<vmem>>) attributes {dimension_semantics = [#tpu.dimension_semantics<parallel>], iteration_bounds = array<i64: 4>, scalar_prefetch = 0 : i64, scratch_operands = 0 : i64, tpu.core_type = #tpu.core_type<tc>, window_params = [{transform_indices = @transform_0, window_bounds = array<i64: 64, 1>}, {transform_indices = @transform_1, window_bounds = array<i64: 64, 64>}, {pipeline_mode = #tpu.pipeline_mode<synchronous>, transform_indices = @transform_2, window_bounds = array<i64: 64, 16>}, {pipeline_mode = #tpu.pipeline_mode<synchronous>, transform_indices = @transform_3, window_bounds = array<i64: 64, 64>}, {pipeline_mode = #tpu.pipeline_mode<synchronous>, transform_indices = @transform_4, window_bounds = array<i64: 1, 64>}, {pipeline_mode = #tpu.pipeline_mode<synchronous>, transform_indices = @transform_5, window_bounds = array<i64: 64, 64>}, {pipeline_mode = #tpu.pipeline_mode<synchronous>, transform_indices = @transform_6, window_bounds = array<i64: 1, 64>}, {pipeline_mode = #tpu.pipeline_mode<synchronous>, transform_indices = @transform_7, window_bounds = array<i64: 64, 16>}, {transform_indices = @transform_8, window_bounds = array<i64: 64, 16>}]} {
    %c0 = arith.constant 0 : index
    %c0_0 = arith.constant 0 : index
    %0 = vector.load %arg2[%c0, %c0_0] : memref<64x64xbf16, #tpu.memory_space<vmem>>, vector<64x64xbf16>
    %1 = arith.extf %0 : vector<64x64xbf16> to vector<64x64xf32>
    %c0_1 = arith.constant 0 : index
    %c0_2 = arith.constant 0 : index
    %2 = vector.load %arg3[%c0_1, %c0_2] : memref<64x16xbf16, #tpu.memory_space<vmem>>, vector<64x16xbf16>
    %cst = arith.constant dense<0.000000e+00> : vector<64x16xf32>
    %3 = tpu.matmul %0, %2, %cst {dimension_numbers = #tpu.dot_dimension_numbers<[1], [0], [0], [1], [0, 0, 1, 1], [], []>} : vector<64x64xbf16>, vector<64x16xbf16>, vector<64x16xf32> -> vector<64x16xf32>
    %4 = arith.mulf %1, %1 : vector<64x64xf32>
    %cst_3 = arith.constant dense<0.000000e+00> : vector<64xf32>
    %5 = vector.multi_reduction <add>, %4, %cst_3 [1] : vector<64x64xf32> to vector<64xf32>
    %6 = vector.shape_cast %5 : vector<64xf32> to vector<64x1xf32>
    %7 = arith.mulf %3, %3 : vector<64x16xf32>
    %cst_4 = arith.constant dense<0.000000e+00> : vector<64xf32>
    %8 = vector.multi_reduction <add>, %7, %cst_4 [1] : vector<64x16xf32> to vector<64xf32>
    %9 = vector.shape_cast %8 : vector<64xf32> to vector<64x1xf32>
    %10 = arith.subf %9, %6 : vector<64x1xf32>
    %cst_5 = arith.constant 5.000000e-01 : f32
    %11 = vector.broadcast %cst_5 : f32 to vector<64x1xf32>
    %12 = arith.mulf %11, %10 : vector<64x1xf32>
    %c0_6 = arith.constant 0 : index
    %c0_7 = arith.constant 0 : index
    %13 = vector.load %arg1[%c0_6, %c0_7] : memref<64x1xf32, #tpu.memory_space<vmem>>, vector<64x1xf32>
    %14 = arith.addf %13, %12 : vector<64x1xf32>
    %c0_8 = arith.constant 0 : index
    %c0_9 = arith.constant 0 : index
    %15 = vector.load %arg4[%c0_8, %c0_9] : memref<64x64xbf16, #tpu.memory_space<vmem>>, vector<64x64xbf16>
    %cst_10 = arith.constant dense<0.000000e+00> : vector<64x64xf32>
    %16 = tpu.matmul %0, %15, %cst_10 {dimension_numbers = #tpu.dot_dimension_numbers<[1], [0], [0], [1], [0, 0, 1, 1], [], []>} : vector<64x64xbf16>, vector<64x64xbf16>, vector<64x64xf32> -> vector<64x64xf32>
    %c0_11 = arith.constant 0 : index
    %c0_12 = arith.constant 0 : index
    %17 = vector.load %arg5[%c0_11, %c0_12] : memref<1x64xf32, #tpu.memory_space<vmem>>, vector<1x64xf32>
    %18 = vector.broadcast %17 : vector<1x64xf32> to vector<64x64xf32>
    %19 = arith.addf %16, %18 : vector<64x64xf32>
    %cst_13 = arith.constant 0.000000e+00 : f32
    %20 = vector.broadcast %cst_13 : f32 to vector<64x64xf32>
    %21 = arith.maximumf %19, %20 : vector<64x64xf32>
    %22 = arith.truncf %21 : vector<64x64xf32> to vector<64x64xbf16>
    %c0_14 = arith.constant 0 : index
    %c0_15 = arith.constant 0 : index
    %23 = vector.load %arg6[%c0_14, %c0_15] : memref<64x64xbf16, #tpu.memory_space<vmem>>, vector<64x64xbf16>
    %cst_16 = arith.constant dense<0.000000e+00> : vector<64x64xf32>
    %24 = tpu.matmul %22, %23, %cst_16 {dimension_numbers = #tpu.dot_dimension_numbers<[1], [0], [0], [1], [0, 0, 1, 1], [], []>} : vector<64x64xbf16>, vector<64x64xbf16>, vector<64x64xf32> -> vector<64x64xf32>
    %c0_17 = arith.constant 0 : index
    %c0_18 = arith.constant 0 : index
    %25 = vector.load %arg7[%c0_17, %c0_18] : memref<1x64xf32, #tpu.memory_space<vmem>>, vector<1x64xf32>
    %26 = vector.broadcast %25 : vector<1x64xf32> to vector<64x64xf32>
    %27 = arith.addf %24, %26 : vector<64x64xf32>
    %cst_19 = arith.constant 0.000000e+00 : f32
    %28 = vector.broadcast %cst_19 : f32 to vector<64x64xf32>
    %29 = arith.maximumf %27, %28 : vector<64x64xf32>
    %30 = arith.truncf %29 : vector<64x64xf32> to vector<64x64xbf16>
    %c0_20 = arith.constant 0 : index
    %c0_21 = arith.constant 0 : index
    %31 = vector.load %arg8[%c0_20, %c0_21] : memref<64x16xbf16, #tpu.memory_space<vmem>>, vector<64x16xbf16>
    %cst_22 = arith.constant dense<0.000000e+00> : vector<64x16xf32>
    %32 = tpu.matmul %30, %31, %cst_22 {dimension_numbers = #tpu.dot_dimension_numbers<[1], [0], [0], [1], [0, 0, 1, 1], [], []>} : vector<64x64xbf16>, vector<64x16xbf16>, vector<64x16xf32> -> vector<64x16xf32>
    %33 = vector.broadcast %14 : vector<64x1xf32> to vector<64x16xf32>
    %34 = arith.addf %33, %32 : vector<64x16xf32>
    %c0_23 = arith.constant 0 : index
    %c0_24 = arith.constant 0 : index
    %35 = vector.load %arg9[%c0_23, %c0_24] : memref<64x16xf32, #tpu.memory_space<vmem>>, vector<64x16xf32>
    tpu.vector_store %arg9[%c0_23, %c0_24], %34 {strides = array<i32>} : memref<64x16xf32, #tpu.memory_space<vmem>>, vector<64x16xf32>,
    return
  }
  func.func @transform_0(%arg0: i32) -> (i32, i32) {
    %c0_i32 = arith.constant 0 : i32
    %c0_i32_0 = arith.constant 0 : i32
    return %arg0, %c0_i32 : i32, i32
  }
  func.func @transform_1(%arg0: i32) -> (i32, i32) {
    %c0_i32 = arith.constant 0 : i32
    %c0_i32_0 = arith.constant 0 : i32
    return %arg0, %c0_i32 : i32, i32
  }
  func.func @transform_2(%arg0: i32) -> (i32, i32) {
    %c0_i32 = arith.constant 0 : i32
    %c0_i32_0 = arith.constant 0 : i32
    %c0_i32_1 = arith.constant 0 : i32
    return %c0_i32, %c0_i32_0 : i32, i32
  }
  func.func @transform_3(%arg0: i32) -> (i32, i32) {
    %c0_i32 = arith.constant 0 : i32
    %c0_i32_0 = arith.constant 0 : i32
    %c0_i32_1 = arith.constant 0 : i32
    return %c0_i32, %c0_i32_0 : i32, i32
  }
  func.func @transform_4(%arg0: i32) -> (i32, i32) {
    %c0_i32 = arith.constant 0 : i32
    %c0_i32_0 = arith.constant 0 : i32
    %c0_i32_1 = arith.constant 0 : i32
    return %c0_i32, %c0_i32_0 : i32, i32
  }
  func.func @transform_5(%arg0: i32) -> (i32, i32) {
    %c0_i32 = arith.constant 0 : i32
    %c0_i32_0 = arith.constant 0 : i32
    %c0_i32_1 = arith.constant 0 : i32
    return %c0_i32, %c0_i32_0 : i32, i32
  }
  func.func @transform_6(%arg0: i32) -> (i32, i32) {
    %c0_i32 = arith.constant 0 : i32
    %c0_i32_0 = arith.constant 0 : i32
    %c0_i32_1 = arith.constant 0 : i32
    return %c0_i32, %c0_i32_0 : i32, i32
  }
  func.func @transform_7(%arg0: i32) -> (i32, i32) {
    %c0_i32 = arith.constant 0 : i32
    %c0_i32_0 = arith.constant 0 : i32
    %c0_i32_1 = arith.constant 0 : i32
    return %c0_i32, %c0_i32_0 : i32, i32
  }
  func.func @transform_8(%arg0: i32) -> (i32, i32) {
    %c0_i32 = arith.constant 0 : i32
    %c0_i32_0 = arith.constant 0 : i32
    return %arg0, %c0_i32 : i32, i32
  }
}

</mosaic_0001>

<bundles_post_ra>
// kernel: tpu_custom_call.1
= control target key start
LH: loop header
LB: loop body
LE: loop exit
PB: predicated region body
PF: predicated region fallthrough
CT: control target
= control target key end

     0   :  { %s1690_s27 = smov 0   ;;  %s1692_s28 = smov 0   ;;  %s1910_s0 = inlined_call_operand.vmem [shape: f32[200,1], index: 0, kind: input, shape index: {}]   ;;  %s1911_s1 = inlined_call_operand.vmem [shape: bf16[200,64], index: 1, kind: input, shape index: {}]   ;;  %s1912_s2 = inlined_call_operand.vmem [shape: bf16[64,16], index: 2, kind: input, shape index: {}]   ;;  %s1913_s3 = inlined_call_operand.vmem [shape: bf16[64,64], index: 3, kind: input, shape index: {}]   ;;  %s1914_s4 = inlined_call_operand.vmem [shape: f32[1,64], index: 4, kind: input, shape index: {}]   ;;  %s1915_s5 = inlined_call_operand.vmem [shape: bf16[64,64], index: 5, kind: input, shape index: {}]   ;;  %s1916_s6 = inlined_call_operand.vmem [shape: f32[1,64], index: 6, kind: input, shape index: {}]   ;;  %s1917_s7 = inlined_call_operand.vmem [shape: bf16[64,16], index: 7, kind: input, shape index: {}]   ;;  %s1918_s8 = inlined_call_operand.vmem [shape: f32[200,16], index: 8, kind: output, shape index: {}]  }
   0x1   :  { %s1694_s29 = smov 0  }
   0x2 LB: > { %s1703_s30 = sadd.s32 4294967295, %s1610_s29   ;;  %s1705_s9 = sadd.s32 1, %s1610_s29   ;;  %s1610_s29 = sphi %s1694_s29, %s1925_s29   ;;  %s1606_s28 = sphi %s1692_s28, %s1924_s28   ;;  %s1602_s27 = sphi %s1690_s27, %s1923_s27  }
   0x3   : > { %s200_s10 = ssub.s32 %s1610_s29, %s1705_s9  ;;  %s203_s11 = sadd.s32 1, %s1606_s28 }
   0x4   : > { %p201_p0 = scmp.eq.s32.totalorder %s200_s10, 0  ;;  %p213_p1 = scmp.ne.s32.totalorder %s1606_s28, %s1602_s27 }
   0x5   : > { %p214_p2 = scmp.eq.s32.totalorder %s1703_s30, 3  ;;  %p1281_p3 = scmp.ge.s32.totalorder %s1610_s29, 1 }
   0x6   : > { %s1713_s12 = scalar_select %p201_p0, %s1606_s28, %s203_s11  }
   0x7   : > { %p1715_p4 = por %p214_p2, %p213_p1  ;;  %p290_p5 = scmp.lt.s32.totalorder %s1610_s29, 5 }
   0x9   : > { %p291_p6 = pnand %p1281_p3, %p290_p5 }
   0xa   : > { %s1723_s16 = sshll.u32 (!%p291_p6), %s1703_s30, 3  ;;  %s333_s15 = sand.u32 (!%p291_p6), 1, %s1602_s27  }
   0xb   : > { %294 = sbr.rel (%p291_p6) target bundleno = 694 (0x2b6), region = 52  ;;  %p341_p7 = scmp.lt.s32.totalorder (!%p291_p6), %s1723_s16, 24 }
   0xc   : > { %s1282_s17 = sshll.u32 (!%p291_p6), %s333_s15, 6 }
   0xd   : > { %s1831_s18 = scalar_lea.vmem (!%p291_p6), [#allocation2], %s1282_s17  }
  0x10   : > { %v1532_v0 = vld [vmem:[%s1913_s3 + $0x18] sm:$0xff]   ;;  %v1533_v1 = vld [vmem:[%s1913_s3 + $0x10] sm:$0xff]   ;;  %v1534_v2 = vld [vmem:[%s1913_s3 + $0x8] sm:$0xff]   ;;  %s1733_s21 = scalar_select %p341_p7, %s1723_s16, 24  ;;  %vm438_vm0 = vcmask 523264   ;;  %vm556_vm1 = vcmask 130048  }
  0x11   : > { %1393 = vmatprep.subr.bf16.mxu1 %v1532_v0  ;;  %v1540_v3 = vld [vmem:[%s1912_s2 + $0x18] sm:$0xff]   ;;  %v1541_v4 = vld [vmem:[%s1912_s2 + $0x10] sm:$0xff]   ;;  %v1535_v5 = vld [vmem:[%s1913_s3] sm:$0xff]   ;;  %s1030_s27 = ssub.s32 (%p1715_p4), 25, %s1723_s16  ;;  %s1342_s19 = sshll.u32 (%p1715_p4), %s1703_s30, 6 }
  0x12   : > { %1394 = vmatpush3.bf16.msra.mxu1 %v1532_v0  ;;  %s1286_s24 = sshll.u32 %s1733_s21, 2  ;;  %1377 = vmatprep.subr.bf16.mxu0 %v1540_v3  ;;  %v1542_v7 = vld [vmem:[%s1912_s2 + $0x8] sm:$0xff]   ;;  %v1543_v10 = vld [vmem:[%s1912_s2] sm:$0xff]   ;;  %v1544_v11 = vld [vmem:[%s1915_s5 + $0x18] sm:$0xff]   ;;  %s1284_s26 = sshll.u32 %s1733_s21, 3 }
  0x13   : > { %1395 = vmatprep.subr.bf16.mxu1 %v1533_v1  ;;  %s358_s11 = scalar_lea.vmem %s1911_s1, %s1286_s24  ;;  %1378 = vmatpush3.bf16.msra.mxu0 %v1540_v3  ;;  %v1545_v13 = vld [vmem:[%s1915_s5 + $0x10] sm:$0xff]   ;;  %v1546_v14 = vld [vmem:[%s1915_s5 + $0x8] sm:$0xff]   ;;  %v1547_v15 = vld [vmem:[%s1915_s5] sm:$0xff]   ;;  %p1031_p8 = scmp.lt.s32.totalorder (%p1715_p4), %s1030_s27, 8 }
  0x14   : > { %v370_v6 = vld [vmem:[%s358_s11] sm:$0xff]   ;;  %1379 = vmatprep.subr.bf16.mxu0 %v1541_v4  ;;  %v372_v8 = vld [vmem:[%s358_s11 + $0x8] sm:$0xff]   ;;  %v374_v9 = vld [vmem:[%s358_s11 + $0x10] sm:$0xff]   ;;  %s1856_s23 = scalar_lea.vmem (%p1715_p4), %s1918_s8, %s1342_s19  }
  0x15   : > { %1401 = vmatprep.mubr.msk.bf16.mxu1 %vm438_vm0, %v370_v6  ;;  %1385 = vmatprep.mubr.msk.bf16.mxu0 %vm438_vm0, %v370_v6  ;;  %v376_v12 = vld [vmem:[%s358_s11 + $0x18] sm:$0xff]   ;;  %v378_v16 = vunpack.c.l.bf16 %v370_v6  ;;  %v380_v17 = vunpack.c.l.bf16 %v372_v8  ;;  %v379_v18 = vunpack.c.h.bf16 %v370_v6  ;;  %v381_v19 = vunpack.c.h.bf16 %v372_v8  ;;  %v1299_v43 = vld [vmem:[%s1914_s4] ss:$0 sm:$0xff]  ;;  %s1813_s11 = scalar_lea.vmem %s1910_s0, %s1284_s26 }
  0x16   : > { %1396 = vmatpush3.bf16.msra.mxu1 %v1533_v1  ;;  %v382_v20 = vunpack.c.l.bf16 %v374_v9  ;;  %v383_v21 = vunpack.c.h.bf16 %v374_v9  ;;  %v384_v28 = vunpack.c.l.bf16 %v376_v12  ;;  %v385_v29 = vunpack.c.h.bf16 %v376_v12  ;;  %v1548_v30 = vld [vmem:[%s1917_s7 + $0x18] sm:$0xff]  }
  0x17   : > { %1397 = vmatprep.subr.bf16.mxu1 %v1534_v2  ;;  %1380 = vmatpush3.bf16.msra.mxu0 %v1541_v4  ;;  %v516_v22 = vmul.f32 %v378_v16, %v378_v16  ;;  %v518_v23 = vmul.f32 %v380_v17, %v380_v17  ;;  %v517_v24 = vmul.f32 %v379_v18, %v379_v18 }
  0x18   : > { %1381 = vmatprep.subr.bf16.mxu0 %v1542_v7  ;;  %v519_v25 = vmul.f32 %v381_v19, %v381_v19  ;;  %v520_v33 = vmul.f32 %v382_v20, %v382_v20  ;;  %v521_v34 = vmul.f32 %v383_v21, %v383_v21  ;;  %v522_v37 = vmul.f32 %v384_v28, %v384_v28 }
  0x19   : > { %v524_v26 = vsel %vm438_vm0, %v516_v22, 0.0  ;;  %v530_v27 = vsel %vm438_vm0, %v518_v23, 0.0  ;;  %v527_v31 = vsel %vm438_vm0, %v517_v24, 0.0  ;;  %v523_v38 = vmul.f32 %v385_v29, %v385_v29 }
  0x1a   : > { %1398 = vmatpush3.bf16.msra.mxu1 %v1534_v2  ;;  %525 = vadd.xlane.f32.xlu0 %v524_v26  ;;  %v533_v32 = vsel %vm438_vm0, %v519_v25, 0.0  ;;  %v536_v35 = vsel %vm438_vm0, %v520_v33, 0.0  ;;  %v539_v36 = vsel %vm438_vm0, %v521_v34, 0.0  ;;  %v542_v39 = vsel %vm438_vm0, %v522_v37, 0.0 }
  0x1b   : > { %1399 = vmatprep.subr.bf16.mxu1 %v1535_v5  ;;  %1382 = vmatpush3.bf16.msra.mxu0 %v1542_v7  ;;  %v545_v40 = vsel %vm438_vm0, %v523_v38, 0.0  ;;  %v1644_v33 = vmov 0  }
  0x1c   : > { %1383 = vmatprep.subr.bf16.mxu0 %v1543_v10  ;;  %531 = vadd.xlane.f32.xlu1 %v530_v27 }
  0x1d   : > { %1531 = vset.pattern.permute.xlu1 %v1644_v33  ;;  %1530 = vset.pattern.permute.xlu0 %v1644_v33 }
  0x1e   : > { %1400 = vmatpush3.bf16.msra.mxu1 %v1535_v5  ;;  %528 = vadd.xlane.f32.xlu0 %v527_v31  ;;  %v1550_v31 = vld [vmem:[%s1917_s7 + $0x8] sm:$0xff]  }
  0x1f   : > { %1384 = vmatpush3.bf16.msra.mxu0 %v1543_v10  ;;  %1425 = vmatprep.subr.bf16.mxu1 %v1548_v30 }
  0x20   : > { %1409 = vmatprep.subr.bf16.mxu0 %v1544_v11  ;;  %534 = vadd.xlane.f32.xlu1 %v533_v32  ;;  %v1551_v32 = vld [vmem:[%s1917_s7] sm:$0xff]  }
  0x21   : > { %1402 = vmatmul.mubr.msk.bf16.vlgmr.msra.gmra.mxu1 %vm438_vm0, %v372_v8 }
  0x22   : > { %1405 = vmatprep.mubr.msk.bf16.mxu1 %vm438_vm0, %v374_v9  ;;  %1386 = vmatmul.mubr.msk.bf16.vlgmr.msra.gmra.mxu0 %vm438_vm0, %v372_v8 }
  0x23   : > { %1389 = vmatprep.mubr.msk.bf16.mxu0 %vm438_vm0, %v374_v9  ;;  %1410 = vmatpush3.bf16.msra.mxu0 %v1544_v11 }
  0x24   : > { %1411 = vmatprep.subr.bf16.mxu0 %v1545_v13  ;;  %1426 = vmatpush3.bf16.msra.mxu1 %v1548_v30  ;;  %v1549_v30 = vld [vmem:[%s1917_s7 + $0x10] sm:$0xff]  }
  0x25   : > { %537 = vadd.xlane.f32.xlu0 %v536_v35  ;;  %540 = vadd.xlane.f32.xlu1 %v539_v36 }
  0x26   : > { %1427 = vmatprep.subr.bf16.mxu1 %v1549_v30 }
  0x27   : > { %1412 = vmatpush3.bf16.msra.mxu0 %v1545_v13 }
  0x28   : > { %1413 = vmatprep.subr.bf16.mxu0 %v1546_v14  ;;  %1428 = vmatpush3.bf16.msra.mxu1 %v1549_v30 }
  0x29   : > { %1406 = vmatmul.mubr.msk.bf16.gmra.mxu1 %vm438_vm0, %v376_v12  ;;  %543 = vadd.xlane.f32.xlu0 %v542_v39 }
  0x2a   : > { %1390 = vmatmul.mubr.msk.bf16.gmra.mxu0 %vm438_vm0, %v376_v12  ;;  %546 = vadd.xlane.f32.xlu1 %v545_v40 }
  0x2b   : > { %1414 = vmatpush3.bf16.msra.mxu0 %v1546_v14  ;;  %1429 = vmatprep.subr.bf16.mxu1 %v1550_v31 }
  0x2c   : > { %1415 = vmatprep.subr.bf16.mxu0 %v1547_v15  ;;  %1430 = vmatpush3.bf16.msra.mxu1 %v1550_v31 }
  0x2d   : > { %1431 = vmatprep.subr.bf16.mxu1 %v1551_v32 }
  0x2f   : > { %1416 = vmatpush3.bf16.msra.mxu0 %v1547_v15 }
  0x30   : > { %1432 = vmatpush3.bf16.msra.mxu1 %v1551_v32 }
  0xa3   : > { %v526_v34 = vpop.xlane.xlu0 %525 }
  0xa5   : > { %v532_v35 = vpop.xlane.xlu1 %531 }
  0xa7   : > { %v529_v36 = vpop.xlane.xlu0 %528 }
  0xa9   : > { %v535_v37 = vpop.xlane.xlu1 %534 }
  0xae   : > { %v538_v38 = vpop.xlane.xlu0 %537  ;;  %v541_v39 = vpop.xlane.xlu1 %540 }
  0xb2   : > { %v544_v40 = vpop.xlane.xlu0 %543 }
  0xe1   : > { %v1403_v41 = vpop.f32.mrf.mxu1 }
  0xe2   : > { %v1387_v45 = vpop.f32.mrf.mxu0  ;;  %v695_v49 = vadd.f32 %v1403_v41, %v1299_v43  ;;  %v547_v41 = vpop.xlane.xlu1 %546 }
  0xe3   : > { %v686_v42 = vpop.f32.mrf.mxu1  ;;  %v550_v48 = vmul.f32 %v1387_v45, %v1387_v45 }
  0xe4   : > { %v687_v46 = vadd.f32 %v1299_v43, %v686_v42  ;;  %v485_v51 = vpop.f32.mrf.mxu0  ;;  %v719_v61 = vmax.f32 %v695_v49, 0.0 }
  0xe5   : > { %v1404_v44 = vpop.f32.mrf.mxu1  ;;  %v548_v53 = vmul.f32 %v485_v51, %v485_v51  ;;  %v563_v54 = vsel %vm556_vm1, %v550_v48, 0.0  ;;  %v597_v51 = vld [vmem:[%s1813_s11] sm:$0xff] }
  0xe6   : > { %v698_v47 = vadd.f32 %v1404_v44, %v1299_v43  ;;  %v1388_v57 = vpop.f32.mrf.mxu0  ;;  %564 = vadd.xlane.f32.xlu0 %v563_v54  ;;  %v717_v58 = vmax.f32 %v687_v46, 0.0  ;;  %v599_v44 = vld [vmem:[%s1813_s11 + $0x10] sm:$0xff] }
  0xe7   : > { %v689_v50 = vpop.f32.mrf.mxu1  ;;  %v551_v60 = vmul.f32 %v1388_v57, %v1388_v57  ;;  %v557_v0 = vsel %vm556_vm1, %v548_v53, 0.0 }
  0xe8   : > { %v690_v52 = vadd.f32 %v1299_v43, %v689_v50  ;;  %v720_v55 = vmax.f32 %v698_v47, 0.0  ;;  %v488_v63 = vpop.f32.mrf.mxu0 }
  0xe9   : > { %v1407_v56 = vpop.f32.mrf.mxu1  ;;  %v549_v2 = vmul.f32 %v488_v63, %v488_v63  ;;  %v566_v6 = vsel %vm556_vm1, %v551_v60, 0.0  ;;  %v598_v60 = vld [vmem:[%s1813_s11 + $0x8] sm:$0xff] }
  0xea   : > { %v718_v59 = vmax.f32 %v690_v52, 0.0  ;;  %v726_v3 = vpack.c.bf16 %v720_v55, %v719_v61  ;;  %v1391_v5 = vpop.f32.mrf.mxu0  ;;  %558 = vadd.xlane.f32.xlu0 %v557_v0  ;;  %567 = vadd.xlane.f32.xlu1 %v566_v6  ;;  %v711_v9 = vadd.f32 %v1407_v56, %v1299_v43  ;;  %v600_v52 = vld [vmem:[%s1813_s11 + $0x18] sm:$0xff] }
  0xeb   : > { %v702_v62 = vpop.f32.mrf.mxu1  ;;  %v560_v12 = vsel %vm556_vm1, %v549_v2, 0.0  ;;  %v554_v14 = vmul.f32 %v1391_v5, %v1391_v5 }
  0xec   : > { %v725_v1 = vpack.c.bf16 %v718_v59, %v717_v58  ;;  %v703_v7 = vadd.f32 %v1299_v43, %v702_v62  ;;  %v501_v11 = vpop.f32.mrf.mxu0  ;;  %v723_v21 = vmax.f32 %v711_v9, 0.0 }
  0xed   : > { %v1408_v4 = vpop.f32.mrf.mxu1  ;;  %v552_v15 = vmul.f32 %v501_v11, %v501_v11  ;;  %v575_v24 = vsel %vm556_vm1, %v554_v14, 0.0 }
  0xee   : > { %v714_v8 = vadd.f32 %v1408_v4, %v1299_v43  ;;  %1417 = vmatprep.mubr.msk.bf16.mxu0 %vm438_vm0, %v725_v1  ;;  %v1392_v17 = vpop.f32.mrf.mxu0  ;;  %v721_v18 = vmax.f32 %v703_v7, 0.0  ;;  %561 = vadd.xlane.f32.xlu1 %v560_v12  ;;  %v601_v7 = vld [vmem:[%s1813_s11 + $0x20] sm:$0xff] }
  0xef   : > { %v705_v10 = vpop.f32.mrf.mxu1  ;;  %1418 = vmatmul.mubr.msk.bf16.vlgmr.msra.gmra.mxu0 %vm438_vm0, %v726_v3  ;;  %v569_v20 = vsel %vm556_vm1, %v552_v15, 0.0  ;;  %v555_v27 = vmul.f32 %v1392_v17, %v1392_v17  ;;  %v603_v3 = vld [vmem:[%s1813_s11 + $0x30] sm:$0xff] }
  0xf0   : > { %v706_v13 = vadd.f32 %v1299_v43, %v705_v10  ;;  %v724_v16 = vmax.f32 %v714_v8, 0.0  ;;  %570 = vadd.xlane.f32.xlu0 %v569_v20  ;;  %v504_v22 = vpop.f32.mrf.mxu0  ;;  %v1308_v20 = vld [vmem:[%s1916_s6] ss:$0 sm:$0xff] }
  0xf1   : > { %v553_v25 = vmul.f32 %v504_v22, %v504_v22  ;;  %v578_v29 = vsel %vm556_vm1, %v555_v27, 0.0 }
  0xf2   : > { %v722_v19 = vmax.f32 %v706_v13, 0.0  ;;  %v728_v26 = vpack.c.bf16 %v724_v16, %v723_v21  ;;  %v602_v13 = vld [vmem:[%s1813_s11 + $0x28] sm:$0xff]  ;;  %v604_v16 = vld [vmem:[%s1813_s11 + $0x38] sm:$0xff] }
  0xf3   : > { %v572_v28 = vsel %vm556_vm1, %v553_v25, 0.0 }
  0xf4   : > { %v727_v23 = vpack.c.bf16 %v722_v19, %v721_v18  ;;  %576 = vadd.xlane.f32.xlu0 %v575_v24  ;;  %573 = vadd.xlane.f32.xlu1 %v572_v28 }
  0xf6   : > { %1421 = vmatprep.mubr.msk.bf16.mxu0 %vm438_vm0, %v727_v23 }
  0xf7   : > { %1422 = vmatmul.mubr.msk.bf16.gmra.mxu0 %vm438_vm0, %v728_v26 }
  0xf8   : > { %579 = vadd.xlane.f32.xlu1 %v578_v29 }
 0x16f   : > { %v565_v42 = vpop.xlane.xlu0 %564 }
 0x170   : > { %v583_v43 = vsub.f32 %v565_v42, %v532_v35 }
 0x172   : > { %v591_v45 = vmul.f32 0.5, %v583_v43 }
 0x173   : > { %v559_v46 = vpop.xlane.xlu0 %558  ;;  %v568_v48 = vpop.xlane.xlu1 %567 }
 0x174   : > { %v607_v47 = vadd.f32 %v599_v44, %v591_v45  ;;  %v581_v49 = vsub.f32 %v559_v46, %v526_v34  ;;  %v584_v50 = vsub.f32 %v568_v48, %v535_v37 }
 0x176   : > { %v589_v53 = vmul.f32 0.5, %v581_v49  ;;  %978 = vperm.xlu1 %1531, %v607_v47   ;;  %v592_v54 = vmul.f32 0.5, %v584_v50 }
 0x177   : > { %v562_v56 = vpop.xlane.xlu1 %561 }
 0x178   : > { %v605_v55 = vadd.f32 %v597_v51, %v589_v53  ;;  %v608_v57 = vadd.f32 %v600_v52, %v592_v54  ;;  %v582_v58 = vsub.f32 %v562_v56, %v529_v36 }
 0x179   : > { %v571_v59 = vpop.xlane.xlu0 %570 }
 0x17a   : > { %968 = vperm.xlu0 %1530, %v605_v55   ;;  %v590_v61 = vmul.f32 0.5, %v582_v58  ;;  %983 = vperm.xlu1 %1531, %v608_v57   ;;  %v585_v62 = vsub.f32 %v571_v59, %v538_v38 }
 0x17c   : > { %v606_v63 = vadd.f32 %v598_v60, %v590_v61  ;;  %v593_v4 = vmul.f32 0.5, %v585_v62 }
 0x17d   : > { %v577_v0 = vpop.xlane.xlu0 %576  ;;  %v574_v2 = vpop.xlane.xlu1 %573 }
 0x17e   : > { %v587_v1 = vsub.f32 %v577_v0, %v544_v40  ;;  %973 = vperm.xlu1 %1531, %v606_v63   ;;  %v586_v6 = vsub.f32 %v574_v2, %v541_v39  ;;  %v609_v10 = vadd.f32 %v601_v7, %v593_v4 }
 0x180   : > { %v595_v5 = vmul.f32 0.5, %v587_v1  ;;  %v594_v11 = vmul.f32 0.5, %v586_v6 }
 0x181   : > { %v580_v9 = vpop.xlane.xlu1 %579 }
 0x182   : > { %v611_v8 = vadd.f32 %v603_v3, %v595_v5  ;;  %v588_v12 = vsub.f32 %v580_v9, %v547_v41  ;;  %v610_v14 = vadd.f32 %v602_v13, %v594_v11 }
 0x184   : > { %998 = vperm.xlu1 %1531, %v611_v8   ;;  %v596_v15 = vmul.f32 0.5, %v588_v12 }
 0x186   : > { %v612_v17 = vadd.f32 %v604_v16, %v596_v15 }
 0x188   : > { %988 = vperm.xlu1 %1531, %v609_v10  }
 0x18c   : > { %993 = vperm.xlu1 %1531, %v610_v14  }
 0x190   : > { %1003 = vperm.xlu1 %1531, %v612_v17  }
 0x1af   : > { %v1419_v18 = vpop.f32.mrf.mxu0 }
 0x1b0   : > { %v823_v24 = vadd.f32 %v1419_v18, %v1308_v20 }
 0x1b1   : > { %v814_v19 = vpop.f32.mrf.mxu0 }
 0x1b2   : > { %v815_v22 = vadd.f32 %v1308_v20, %v814_v19  ;;  %v847_v31 = vmax.f32 %v823_v24, 0.0 }
 0x1b3   : > { %v1420_v21 = vpop.f32.mrf.mxu0 }
 0x1b4   : > { %v826_v23 = vadd.f32 %v1420_v21, %v1308_v20  ;;  %v845_v29 = vmax.f32 %v815_v22, 0.0 }
 0x1b5   : > { %v817_v25 = vpop.f32.mrf.mxu0 }
 0x1b6   : > { %v818_v26 = vadd.f32 %v1308_v20, %v817_v25  ;;  %v848_v27 = vmax.f32 %v826_v23, 0.0 }
 0x1b7   : > { %v1423_v28 = vpop.f32.mrf.mxu0 }
 0x1b8   : > { %v846_v30 = vmax.f32 %v818_v26, 0.0  ;;  %v854_v34 = vpack.c.bf16 %v848_v27, %v847_v31  ;;  %v839_v38 = vadd.f32 %v1423_v28, %v1308_v20 }
 0x1b9   : > { %v830_v32 = vpop.f32.mrf.mxu0 }
 0x1ba   : > { %v853_v33 = vpack.c.bf16 %v846_v30, %v845_v29  ;;  %v831_v36 = vadd.f32 %v1308_v20, %v830_v32  ;;  %v851_v44 = vmax.f32 %v839_v38, 0.0 }
 0x1bb   : > { %v1424_v35 = vpop.f32.mrf.mxu0 }
 0x1bc   : > { %v842_v37 = vadd.f32 %v1424_v35, %v1308_v20  ;;  %1433 = vmatprep.mubr.msk.bf16.mxu1 %vm438_vm0, %v853_v33  ;;  %v849_v42 = vmax.f32 %v831_v36, 0.0 }
 0x1bd   : > { %v833_v39 = vpop.f32.mrf.mxu0  ;;  %1434 = vmatmul.mubr.msk.bf16.vlgmr.msra.gmra.mxu1 %vm438_vm0, %v854_v34 }
 0x1be   : > { %v834_v40 = vadd.f32 %v1308_v20, %v833_v39  ;;  %v852_v41 = vmax.f32 %v842_v37, 0.0 }
 0x1c0   : > { %v850_v43 = vmax.f32 %v834_v40, 0.0  ;;  %v856_v46 = vpack.c.bf16 %v852_v41, %v851_v44 }
 0x1c2   : > { %v855_v45 = vpack.c.bf16 %v850_v43, %v849_v42 }
 0x1c4   : > { %1437 = vmatprep.mubr.msk.bf16.mxu1 %vm438_vm0, %v855_v45 }
 0x1c5   : > { %1438 = vmatmul.mubr.msk.bf16.gmra.mxu1 %vm438_vm0, %v856_v46 }
 0x1f1   : > { %v979_v47 = vpop.permute.xlu1 %978 }
 0x1f5   : > { %v984_v48 = vpop.permute.xlu1 %983  ;;  %v969_v54 = vpop.permute.xlu0 %968 }
 0x1f9   : > { %v974_v49 = vpop.permute.xlu1 %973 }
 0x1ff   : > { %v999_v50 = vpop.permute.xlu1 %998 }
 0x203   : > { %v989_v51 = vpop.permute.xlu1 %988 }
 0x207   : > { %v994_v59 = vpop.permute.xlu1 %993 }
 0x20b   : > { %v1004_v2 = vpop.permute.xlu1 %1003 }
 0x27d   : > { %v1435_v52 = vpop.f32.mrf.mxu1 }
 0x27e   : > { %v1008_v53 = vadd.f32 %v1435_v52, %v979_v47 }
 0x27f   : > { %v935_v55 = vpop.f32.mrf.mxu1 }
 0x280   : > { %1016 = vst.msk [vmem:[%s1831_s18 + $0x10] sm:$0xff] %vm556_vm1, %v1008_v53  ;;  %v1006_v56 = vadd.f32 %v969_v54, %v935_v55 }
 0x281   : > { %v1436_v57 = vpop.f32.mrf.mxu1 }
 0x282   : > { %1014 = vst.msk [vmem:[%s1831_s18] sm:$0xff] %vm556_vm1, %v1006_v56  ;;  %v1009_v58 = vadd.f32 %v1436_v57, %v984_v48 }
 0x283   : > { %v938_v60 = vpop.f32.mrf.mxu1 }
 0x284   : > { %1017 = vst.msk [vmem:[%s1831_s18 + $0x18] sm:$0xff] %vm556_vm1, %v1009_v58  ;;  %v1007_v61 = vadd.f32 %v974_v49, %v938_v60 }
 0x285   : > { %v1439_v62 = vpop.f32.mrf.mxu1 }
 0x286   : > { %1015 = vst.msk [vmem:[%s1831_s18 + $0x8] sm:$0xff] %vm556_vm1, %v1007_v61  ;;  %v1012_v63 = vadd.f32 %v1439_v62, %v999_v50 }
 0x287   : > { %v951_v0 = vpop.f32.mrf.mxu1 }
 0x288   : > { %1020 = vst.msk [vmem:[%s1831_s18 + $0x30] sm:$0xff] %vm556_vm1, %v1012_v63  ;;  %v1010_v1 = vadd.f32 %v989_v51, %v951_v0 }
 0x289   : > { %v1440_v3 = vpop.f32.mrf.mxu1 }
 0x28a   : > { %1018 = vst.msk [vmem:[%s1831_s18 + $0x20] sm:$0xff] %vm556_vm1, %v1010_v1  ;;  %v1013_v4 = vadd.f32 %v1440_v3, %v1004_v2  ;;  %1028 = sbr.rel (!%p1715_p4) target bundleno = 694 (0x2b6), region = 56 }
 0x28b   : > { %v954_v5 = vpop.f32.mrf.mxu1 }
 0x28c   : > { %1021 = vst.msk [vmem:[%s1831_s18 + $0x38] sm:$0xff] %vm556_vm1, %v1013_v4  ;;  %v1011_v6 = vadd.f32 %v994_v59, %v954_v5 }
 0x28e   : > { %1019 = vst.msk [vmem:[%s1831_s18 + $0x28] sm:$0xff] %vm556_vm1, %v1011_v6 }
 0x28f   : > { %s1927_s27 = smov (!%p1031_p8, %s1030_s27), 8 }
 0x290   : > { %s1327_s24 = sshll.u32 %s1927_s27, 7 }
 0x291   : > { %p1330_p9 = scmp.eq.s32.totalorder %s1327_s24, 0 }
 0x292   : > { %s1862_s25 = sshrl.u32 (!%p1330_p9), %s1927_s27, 3 }
 0x293   : > { %1039 = sbr.rel (%p1330_p9) target bundleno = 694 (0x2b6), region = 60  ;;  %p1331_p10 = scmp.le.s32.totalorder (!%p1330_p9), %s1862_s25, 0 }
 0x298   : > { %1228 = sbr.rel (%p1331_p10) target bundleno = 677 (0x2a5), region = 139  ;;  %s1920_s30 = smov (!%p1331_p10), %s1856_s23 }
 0x299   : > { %s1921_s13 = smov (!%p1331_p10), %s1831_s18  ;;  %s1871_s16 = smov (!%p1331_p10), 0  }
 0x29a   : > { %s1873_s26 = smov (!%p1331_p10), 0  }
 0x29d LB: >> { %v1116_v7 = vld [vmem:[%s1618_s13] sm:$0xff]  ;;  %v1118_v8 = vld [vmem:[%s1618_s13 + $0x8] sm:$0xff]  ;;  %v1120_v9 = vld [vmem:[%s1618_s13 + $0x10] sm:$0xff]  ;;  %s1132_s29 = sadd.s32 1, %s1622_s16  ;;  %s1110_s26 = sadd.s32 1, %s1626_s26   ;;  %s1626_s26 = sphi %s1873_s26, %s1110_s26   ;;  %s1622_s16 = sphi %s1871_s16, %s1922_s16   ;;  %s1618_s13 = sphi %s1921_s13, %s1137_s13   ;;  %s1614_s30 = sphi %s1920_s30, %s1138_s30  }
 0x29e   : >> { %1117 = vst [vmem:[%s1614_s30] sm:$0xff] %v1116_v7  ;;  %1119 = vst [vmem:[%s1614_s30 + $0x8] sm:$0xff] %v1118_v8  ;;  %v1122_v10 = vld [vmem:[%s1618_s13 + $0x18] sm:$0xff]  ;;  %v1124_v11 = vld [vmem:[%s1618_s13 + $0x20] sm:$0xff]  ;;  %p1133_p11 = scmp.ge.s32.totalorder %s1132_s29, %s1862_s25  ;;  %p1109_p12 = scmp.ge.s32.totalorder %s1110_s26, %s1862_s25 }
 0x29f   : >> { %1121 = vst [vmem:[%s1614_s30 + $0x10] sm:$0xff] %v1120_v9  ;;  %v1126_v12 = vld [vmem:[%s1618_s13 + $0x28] sm:$0xff]  ;;  %1123 = vst [vmem:[%s1614_s30 + $0x18] sm:$0xff] %v1122_v10  ;;  %v1128_v13 = vld [vmem:[%s1618_s13 + $0x30] sm:$0xff] }
 0x2a0   : >> { %1125 = vst [vmem:[%s1614_s30 + $0x20] sm:$0xff] %v1124_v11  ;;  %1127 = vst [vmem:[%s1614_s30 + $0x28] sm:$0xff] %v1126_v12  ;;  %v1130_v14 = vld [vmem:[%s1618_s13 + $0x38] sm:$0xff]  ;;  %s1929_s29 = smov (%p1133_p11, %s1132_s29), 0  ;;  %1112 = sbr.rel (!%p1109_p12) target bundleno = 669 (0x29d), region = 145 }
 0x2a1   : >> { %1129 = vst [vmem:[%s1614_s30 + $0x30] sm:$0xff] %v1128_v13  ;;  %1131 = vst [vmem:[%s1614_s30 + $0x38] sm:$0xff] %v1130_v14  ;;  %s1332_s10 = sshll.u32 %s1929_s29, 6  ;;  %s1922_s16 = smov %s1929_s29 }
 0x2a2   : >> { %s1137_s13 = scalar_lea.vmem %s1831_s18, %s1332_s10 [#allocation2]   ;;  %s1138_s30 = scalar_lea.vmem %s1856_s23, %s1332_s10  }
 0x2a5 PF: > { %s1892_s11 = sand.u32 7, %s1927_s27   ;;  %s1343_s21 = sshll.u32 %s1862_s25, 6 }
 0x2a6   : > { %s1143_s14 = scalar_lea.vmem %s1831_s18, %s1343_s21 [#allocation2]   ;;  %s1145_s15 = scalar_lea.vmem %s1856_s23, %s1343_s21  }
 0x2a7   : > { %p1337_p13 = scmp.le.s32.totalorder %s1892_s11, 0 }
 0x2a8   : > { %s1628_s17 = smov (!%p1337_p13), %s1145_s15   ;;  %s1632_s19 = smov (!%p1337_p13), %s1143_s14  }
 0x2a9   : > { %1242 = sbr.rel (%p1337_p13) target bundleno = 694 (0x2b6), region = 150  ;;  %s1636_s20 = smov (!%p1337_p13), 0  }
 0x2aa   : > { %s1640_s22 = smov (!%p1337_p13), 0  }
 0x2ae LB: >> { %v1155_v15 = vld [vmem:[%s1634_s19] sm:$0xff]  ;;  %s1157_s27 = sadd.s32 1, %s1638_s20  ;;  %s1149_s22 = sadd.s32 1, %s1642_s22   ;;  %s1642_s22 = sphi %s1640_s22, %s1149_s22   ;;  %s1638_s20 = sphi %s1636_s20, %s1637_s20   ;;  %s1634_s19 = sphi %s1632_s19, %s1162_s19   ;;  %s1630_s17 = sphi %s1628_s17, %s1163_s17  }
 0x2af   : >> { %1156 = vst [vmem:[%s1630_s17] sm:$0xff] %v1155_v15  ;;  %p1158_p0 = scmp.ge.s32.totalorder %s1157_s27, %s1892_s11  ;;  %p1148_p1 = scmp.ge.s32.totalorder %s1149_s22, %s1892_s11 }
 0x2b1   : >> { %s1931_s27 = smov (%p1158_p0, %s1157_s27), 0  ;;  %1151 = sbr.rel (!%p1148_p1) target bundleno = 686 (0x2ae), region = 156 }
 0x2b2   : >> { %s1338_s18 = sshll.u32 %s1931_s27, 3  ;;  %s1637_s20 = smov %s1931_s27  }
 0x2b3   : >> { %s1162_s19 = scalar_lea.vmem %s1143_s14, %s1338_s18 [#allocation2]   ;;  %s1163_s17 = scalar_lea.vmem %s1145_s15, %s1338_s18  }
 0x2b6 PF: > { %p15_p2 = scmp.ge.s32.totalorder %s1705_s9, 6   ;;  %s1923_s27 = smov %s1606_s28 }
 0x2b7   : > { %s1924_s28 = smov %s1713_s12  ;;  %s1925_s29 = smov %s1705_s9 }
 0x2b8   :  { %17 = sbr.rel (!%p15_p2) target bundleno = 2 (0x2), region = 167 }

</bundles_post_ra>
